<compile_context>
chip_gen: v6e
topology: v6e:2x2x1
jax: 0.10.0
libtpu: 0.0.40
codegen_flags: <defaults>
</compile_context>

<pallas_src>
import functools

import jax
import jax.numpy as jnp
from jax.experimental import pallas as pl
from jax.experimental.pallas import tpu as pltpu


# ----------------------------------------------------------------------------
# helpers
# ----------------------------------------------------------------------------
def _round_up(x, m):
    return ((x + m - 1) // m) * m


def _pick_tile(n, pref, align=128):
    """Pick a row tile (multiple of 128) and the padded row count."""
    n_al = _round_up(n, align)
    if n_al <= pref:
        return n_al, n_al
    return pref, _round_up(n, pref)


def _pad_rows(a, n_pad):
    n = a.shape[0]
    if n == n_pad:
        return a
    return jnp.pad(a, ((0, n_pad - n),) + ((0, 0),) * (a.ndim - 1))


# ----------------------------------------------------------------------------
# Kernel 1: fused K-way 1x1 conv == tiled matmul (N, Cin) @ (Cin, K*Cout)
# ----------------------------------------------------------------------------
def _conv1x1_kernel(x_ref, w_ref, o_ref):
    o_ref[...] = jnp.dot(
        x_ref[...], w_ref[...], preferred_element_type=jnp.float32
    ).astype(o_ref.dtype)


def conv1x1_all(x, w_all, *, tile=512):
    """x: (N, Cin) bf16, w_all: (Cin, K*Cout) bf16 -> (N, K*Cout) bf16."""
    n, cin = x.shape
    cout = w_all.shape[1]
    tm, n_pad = _pick_tile(n, tile)
    x_p = _pad_rows(x, n_pad)
    out = pl.pallas_call(
        _conv1x1_kernel,
        out_shape=jax.ShapeDtypeStruct((n_pad, cout), jnp.bfloat16),
        grid=(n_pad // tm,),
        in_specs=[
            pl.BlockSpec((tm, cin), lambda i: (i, 0)),
            pl.BlockSpec((cin, cout), lambda i: (0, 0)),   # resident weights
        ],
        out_specs=pl.BlockSpec((tm, cout), lambda i: (i, 0)),
        compiler_params=pltpu.CompilerParams(
            dimension_semantics=("parallel",),             # megacore on v7x
            vmem_limit_bytes=32 * 1024 * 1024,
        ),
    )(x_p, w_all)
    return out[:n]


# ----------------------------------------------------------------------------
# Kernel 2: per-step InfoNCE loss, tiled over rows.
#   zt_ref  : (TN, C)      bf16  context rows for this tile
#   src_ref : (N_pad, C)   bf16  full W_k-transformed rows (VMEM resident;
#                                source of both positives and negatives)
#   idx_ref : (NEG, TN)    int32 negative row indices for this tile
#   out_ref : (1, TN)      f32   lane-partial sums of -log_softmax[0],
#                                accumulated across the grid ("arbitrary")
# ----------------------------------------------------------------------------
def _infonce_loss_kernel(n_valid, num_neg, zt_ref, src_ref, idx_ref, out_ref):
    i = pl.program_id(0)
    tn = zt_ref.shape[0]
    n_src = src_ref.shape[0]
    row0 = i * tn

    @pl.when(i == 0)
    def _():
        out_ref[...] = jnp.zeros_like(out_ref)

    # All pairwise scores on the MXU: a[m, n] = ztwk[m] . zt[row0 + n]
    a = jax.lax.dot_general(
        src_ref[...], zt_ref[...],
        (((1,), (1,)), ((), ())),
        preferred_element_type=jnp.float32,
    )                                                       # (N_pad, TN) f32

    m_iota = jax.lax.broadcasted_iota(jnp.int32, (n_src, tn), 0)
    n_iota = jax.lax.broadcasted_iota(jnp.int32, (n_src, tn), 1)

    # positive score: diagonal band m == row0 + n  ->  (1, TN), lane-dense
    pos_sel = m_iota == (n_iota + row0)
    s_pos = jnp.sum(jnp.where(pos_sel, a, 0.0), axis=0, keepdims=True)

    # negative scores: one-hot row selection from the score matrix
    idx = idx_ref[...]                                      # (NEG, TN) int32
    neg_scores = []
    for j in range(num_neg):                                # static, small
        sel = m_iota == idx[j:j + 1, :]                     # bcast over sublanes
        neg_scores.append(
            jnp.sum(jnp.where(sel, a, 0.0), axis=0, keepdims=True))  # (1, TN)

    # lane-dense logsumexp over the (1 + NEG) candidates
    m = s_pos
    for s_j in neg_scores:
        m = jnp.maximum(m, s_j)
    denom = jnp.exp(s_pos - m)
    for s_j in neg_scores:
        denom = denom + jnp.exp(s_j - m)
    per_elem = (m + jnp.log(denom)) - s_pos                 # (1, TN), = -log_softmax[0]

    # mask rows beyond the true N (padding)
    lane = jax.lax.broadcasted_iota(jnp.int32, (1, tn), 1)
    per_elem = jnp.where((row0 + lane) < n_valid, per_elem, 0.0)

    out_ref[...] += per_elem


def infonce_step_loss(zt_k, ztwk_k, idx2d, *, tile=256):
    """zt_k, ztwk_k: (N, C); idx2d: (NEG, N) int32. Returns mean NLL (f32)."""
    n, c = zt_k.shape
    num_neg = idx2d.shape[0]
    tn, n_pad = _pick_tile(n, tile)

    zt_p = _pad_rows(zt_k.astype(jnp.bfloat16), n_pad)
    src_p = _pad_rows(ztwk_k.astype(jnp.bfloat16), n_pad)
    idx_p = jnp.pad(idx2d, ((0, 0), (0, n_pad - n)))

    kern = functools.partial(_infonce_loss_kernel, n, num_neg)
    out = pl.pallas_call(
        kern,
        out_shape=jax.ShapeDtypeStruct((1, tn), jnp.float32),
        grid=(n_pad // tn,),
        in_specs=[
            pl.BlockSpec((tn, c), lambda i: (i, 0)),        # zt tile
            pl.BlockSpec((n_pad, c), lambda i: (0, 0)),     # full ztwk (resident)
            pl.BlockSpec((num_neg, tn), lambda i: (0, i)),  # idx tile
        ],
        out_specs=pl.BlockSpec((1, tn), lambda i: (0, 0)),  # accumulator
        compiler_params=pltpu.CompilerParams(
            dimension_semantics=("arbitrary",),             # output accumulates
            vmem_limit_bytes=32 * 1024 * 1024,
        ),
    )(zt_p, src_p, idx_p)
    return jnp.sum(out) / n


# ----------------------------------------------------------------------------
# Forward pass equivalent to InfoNCE_Loss.forward
# ----------------------------------------------------------------------------
def infonce_forward(ztk, zt, weights, negative_samples, key):
    """ztk: (B, Cin, H, W), zt: (B, Cout, H, W), weights: list of (Cout, Cin)."""
    B, Cin, H, W = ztk.shape
    Cout = zt.shape[1]
    K = len(weights)
    WB = W * B

    # One NCHW -> (rows, channels) permute per tensor (rows ordered h, w, b).
    x_full = jnp.transpose(ztk, (2, 3, 0, 1)).reshape(H * WB, Cin).astype(jnp.bfloat16)
    zt_full = jnp.transpose(zt, (2, 3, 0, 1)).reshape(H * WB, Cout).astype(jnp.bfloat16)

    # All K 1x1 convs fused into one lane-dense matmul.
    w_all = jnp.concatenate([w.T for w in weights], axis=1).astype(jnp.bfloat16)
    ztwk_all = conv1x1_all(x_full, w_all)                   # (H*W*B, K*Cout) bf16

    total = jnp.float32(0.0)
    for k in range(1, K + 1):
        nk = (H - (k + 1)) * WB
        ztwk_k = ztwk_all[(k + 1) * WB:, (k - 1) * Cout: k * Cout]   # (nk, Cout)
        zt_k = zt_full[:nk]                                          # (nk, Cout)

        key, sub = jax.random.split(key)
        rand_idx = jax.random.randint(sub, (nk * negative_samples,), 0, nk,
                                      dtype=jnp.int32)
        idx2d = rand_idx.reshape(nk, negative_samples).T             # (NEG, nk)

        total = total + infonce_step_loss(zt_k, ztwk_k, idx2d)
    return total / K


# ----------------------------------------------------------------------------
# Pure-JAX reference (same bf16 input rounding) for a correctness check.
# ----------------------------------------------------------------------------
def infonce_reference(ztk, zt, weights, negative_samples, key):
    B, Cin, H, W = ztk.shape
    Cout = zt.shape[1]
    K = len(weights)
    WB = W * B
    hi = jax.lax.Precision.HIGHEST

    x_full = jnp.transpose(ztk, (2, 3, 0, 1)).reshape(H * WB, Cin)
    x_full = x_full.astype(jnp.bfloat16).astype(jnp.float32)
    zt_full = jnp.transpose(zt, (2, 3, 0, 1)).reshape(H * WB, Cout)
    zt_full = zt_full.astype(jnp.bfloat16).astype(jnp.float32)

    total = jnp.float32(0.0)
    for k in range(1, K + 1):
        nk = (H - (k + 1)) * WB
        wk = weights[k - 1].T.astype(jnp.bfloat16).astype(jnp.float32)
        ztwk = jnp.matmul(x_full, wk, precision=hi)
        ztwk = ztwk.astype(jnp.bfloat16).astype(jnp.float32)[(k + 1) * WB:]
        ztc = zt_full[:nk]

        key, sub = jax.random.split(key)
        rand_idx = jax.random.randint(sub, (nk * negative_samples,), 0, nk,
                                      dtype=jnp.int32)
        neg = ztwk[rand_idx].reshape(nk, negative_samples, Cout)

        s_pos = jnp.einsum('nc,nc->n', ztc, ztwk, precision=hi)
        s_neg = jnp.einsum('nc,njc->nj', ztc, neg, precision=hi)
        s = jnp.concatenate([s_pos[:, None], s_neg], axis=1)
        m = jnp.max(s, axis=1, keepdims=True)
        lse = m[:, 0] + jnp.log(jnp.sum(jnp.exp(s - m), axis=1))
        total = total + jnp.mean(lse - s_pos)
    return total / K


# ----------------------------------------------------------------------------
if __name__ == "__main__":
    # Small shapes consistent with the module: B=2, C=32, H=W=8,
    # prediction_step=2, negative_samples=4.
    B, C, H, W = 2, 32, 8, 8
    K_PRED = 2
    NEG = 4

    key = jax.random.PRNGKey(0)
    k_ztk, k_zt, k_w, k_neg = jax.random.split(key, 4)

    ztk = jax.random.normal(k_ztk, (B, C, H, W), dtype=jnp.float32)
    zt = jax.random.normal(k_zt, (B, C, H, W), dtype=jnp.float32)

    # k_predictions 1x1-conv weight matrices of shape (Cout, Cin).
    w_keys = jax.random.split(k_w, K_PRED)
    weights = [
        jax.random.normal(wk, (C, C), dtype=jnp.float32) / jnp.sqrt(C)
        for wk in w_keys
    ]

    loss = infonce_forward(ztk, zt, weights, NEG, k_neg)
    loss = jax.block_until_ready(loss)

    ref = infonce_reference(ztk, zt, weights, NEG, k_neg)
    ref = jax.block_until_ready(ref)

    assert jnp.isfinite(loss), "loss is not finite"
    assert jnp.allclose(loss, ref, rtol=1e-2, atol=1e-2), (loss, ref)
    print("KERNEL_OK")
</pallas_src>

<mosaic_0001>
module attributes {stable_mosaic.version = 11 : i64} {
  func.func @_conv1x1_kernel(%arg0: i32, %arg1: memref<128x32xbf16, #tpu.memory_space<vmem>>, %arg2: memref<32x64xbf16, #tpu.memory_space<vmem>>, %arg3: memref<128x64xbf16, #tpu.memory_space<vmem>>) attributes {dimension_semantics = [#tpu.dimension_semantics<parallel>], iteration_bounds = array<i64: 1>, scalar_prefetch = 0 : i64, scratch_operands = 0 : i64, tpu.core_type = #tpu.core_type<tc>, window_params = [{transform_indices = @transform_0, window_bounds = array<i64: 128, 32>}, {pipeline_mode = #tpu.pipeline_mode<synchronous>, transform_indices = @transform_1, window_bounds = array<i64: 32, 64>}, {transform_indices = @transform_2, window_bounds = array<i64: 128, 64>}]} {
    %c0 = arith.constant 0 : index
    %c0_0 = arith.constant 0 : index
    %0 = vector.load %arg1[%c0, %c0_0] : memref<128x32xbf16, #tpu.memory_space<vmem>>, vector<128x32xbf16>
    %c0_1 = arith.constant 0 : index
    %c0_2 = arith.constant 0 : index
    %1 = vector.load %arg2[%c0_1, %c0_2] : memref<32x64xbf16, #tpu.memory_space<vmem>>, vector<32x64xbf16>
    %cst = arith.constant dense<0.000000e+00> : vector<128x64xf32>
    %2 = tpu.matmul %0, %1, %cst {dimension_numbers = #tpu.dot_dimension_numbers<[1], [0], [0], [1], [0, 0, 1, 1], [], []>} : vector<128x32xbf16>, vector<32x64xbf16>, vector<128x64xf32> -> vector<128x64xf32>
    %3 = arith.truncf %2 : vector<128x64xf32> to vector<128x64xbf16>
    %c0_3 = arith.constant 0 : index
    %c0_4 = arith.constant 0 : index
    %4 = vector.load %arg3[%c0_3, %c0_4] : memref<128x64xbf16, #tpu.memory_space<vmem>>, vector<128x64xbf16>
    tpu.vector_store %arg3[%c0_3, %c0_4], %3 {strides = array<i32>} : memref<128x64xbf16, #tpu.memory_space<vmem>>, vector<128x64xbf16>,
    return
  }
  func.func @transform_0(%arg0: i32) -> (i32, i32) {
    %c0_i32 = arith.constant 0 : i32
    %c0_i32_0 = arith.constant 0 : i32
    return %arg0, %c0_i32 : i32, i32
  }
  func.func @transform_1(%arg0: i32) -> (i32, i32) {
    %c0_i32 = arith.constant 0 : i32
    %c0_i32_0 = arith.constant 0 : i32
    %c0_i32_1 = arith.constant 0 : i32
    return %c0_i32, %c0_i32_0 : i32, i32
  }
  func.func @transform_2(%arg0: i32) -> (i32, i32) {
    %c0_i32 = arith.constant 0 : i32
    %c0_i32_0 = arith.constant 0 : i32
    return %arg0, %c0_i32 : i32, i32
  }
}

</mosaic_0001>

<bundles_post_ra>
// kernel: tpu_custom_call.1
= control target key start
LH: loop header
LB: loop body
LE: loop exit
PB: predicated region body
PF: predicated region fallthrough
CT: control target
= control target key end

     0   :  { %vm84_vm0 = vcmask 261120   ;;  %vm270_vm1 = vcmask 519168   ;;  %s502_s1 = inlined_call_operand.vmem [shape: bf16[32,64], index: 1, kind: input, shape index: {}]   ;;  %s503_s0 = inlined_call_operand.vmem [shape: bf16[128,32], index: 0, kind: input, shape index: {}]   ;;  %s504_s2 = inlined_call_operand.vmem [shape: bf16[128,64], index: 2, kind: output, shape index: {}]  }
   0x1   :  { %v375_v0 = vld [vmem:[%s502_s1 + $0x8] sm:$0xff]   ;;  %v376_v1 = vld [vmem:[%s502_s1] sm:$0xff]   ;;  %v381_v6 = vld [vmem:[%s503_s0 + $0x10] sm:$0xff]  }
   0x2   :  { %351 = vmatprep.subr.bf16.mxu0 %v375_v0  ;;  %371 = vmatprep.subr.bf16.mxu1 %v375_v0  ;;  %v377_v2 = vld [vmem:[%s503_s0] sm:$0xff]   ;;  %v379_v4 = vld [vmem:[%s503_s0 + $0x8] sm:$0xff]   ;;  %v382_v7 = vld [vmem:[%s503_s0 + $0x30] sm:$0xff]  }
   0x3   :  { %352 = vmatpush3.bf16.msra.mxu0 %v375_v0  ;;  %373 = vmatpush3.bf16.msra.mxu1 %v375_v0  ;;  %v378_v3 = vld [vmem:[%s503_s0 + $0x20] sm:$0xff]   ;;  %v380_v5 = vld [vmem:[%s503_s0 + $0x28] sm:$0xff]   ;;  %v383_v8 = vld [vmem:[%s503_s0 + $0x18] sm:$0xff]  }
   0x4   :  { %353 = vmatprep.subr.bf16.mxu0 %v376_v1  ;;  %372 = vmatprep.subr.bf16.mxu1 %v376_v1  ;;  %v384_v9 = vld [vmem:[%s503_s0 + $0x38] sm:$0xff]  }
   0x5   :  { %355 = vmatprep.mubr.msk.bf16.mxu0 %vm84_vm0, %v377_v2  ;;  %363 = vmatprep.mubr.msk.bf16.mxu1 %vm84_vm0, %v378_v3 }
   0x7   :  { %354 = vmatpush3.bf16.msra.mxu0 %v376_v1  ;;  %374 = vmatpush3.bf16.msra.mxu1 %v376_v1 }
   0xa   :  { %356 = vmatmul.mubr.msk.bf16.vlgmr.msra.gmra.mxu0 %vm84_vm0, %v379_v4  ;;  %364 = vmatmul.mubr.msk.bf16.vlgmr.msra.gmra.mxu1 %vm84_vm0, %v380_v5 }
   0xb   :  { %359 = vmatprep.mubr.msk.bf16.mxu0 %vm84_vm0, %v381_v6  ;;  %367 = vmatprep.mubr.msk.bf16.mxu1 %vm84_vm0, %v382_v7 }
  0x12   :  { %360 = vmatmul.mubr.msk.bf16.gmra.mxu0 %vm84_vm0, %v383_v8  ;;  %368 = vmatmul.mubr.msk.bf16.gmra.mxu1 %vm84_vm0, %v384_v9 }
  0xca   :  { %v357_v10 = vpop.f32.mrf.mxu0  ;;  %v365_v11 = vpop.f32.mrf.mxu1 }
  0xcb   :  { %v327_v12 = vpack.c.bf16 %v357_v10, %v357_v10  ;;  %v335_v13 = vpack.c.bf16 %v365_v11, %v365_v11 }
  0xcc   :  { %v143_v14 = vpop.f32.mrf.mxu0  ;;  %v175_v15 = vpop.f32.mrf.mxu1 }
  0xcd   :  { %273 = vst.msk [vmem:[%s504_s2 + $0x8] sm:$0xf] %vm270_vm1, %v327_v12  ;;  %281 = vst.msk [vmem:[%s504_s2 + $0x28] sm:$0xf] %vm270_vm1, %v335_v13  ;;  %v325_v16 = vpack.c.bf16 %v143_v14, %v143_v14  ;;  %v333_v17 = vpack.c.bf16 %v175_v15, %v175_v15 }
  0xce   :  { %v358_v18 = vpop.f32.mrf.mxu0  ;;  %v366_v19 = vpop.f32.mrf.mxu1 }
  0xcf   :  { %271 = vst.msk [vmem:[%s504_s2] sm:$0xf] %vm270_vm1, %v325_v16  ;;  %279 = vst.msk [vmem:[%s504_s2 + $0x20] sm:$0xf] %vm270_vm1, %v333_v17  ;;  %v328_v20 = vpack.c.bf16 %v358_v18, %v358_v18  ;;  %v336_v21 = vpack.c.bf16 %v366_v19, %v366_v19 }
  0xd0   :  { %v146_v22 = vpop.f32.mrf.mxu0  ;;  %v178_v23 = vpop.f32.mrf.mxu1 }
  0xd1   :  { %274 = vst.msk [vmem:[%s504_s2 + $0xc] sm:$0xf] %vm270_vm1, %v328_v20  ;;  %282 = vst.msk [vmem:[%s504_s2 + $0x2c] sm:$0xf] %vm270_vm1, %v336_v21  ;;  %v326_v24 = vpack.c.bf16 %v146_v22, %v146_v22  ;;  %v334_v25 = vpack.c.bf16 %v178_v23, %v178_v23 }
  0xd2   :  { %v361_v26 = vpop.f32.mrf.mxu0  ;;  %v369_v27 = vpop.f32.mrf.mxu1 }
  0xd3   :  { %272 = vst.msk [vmem:[%s504_s2 + $0x4] sm:$0xf] %vm270_vm1, %v326_v24  ;;  %280 = vst.msk [vmem:[%s504_s2 + $0x24] sm:$0xf] %vm270_vm1, %v334_v25  ;;  %v331_v28 = vpack.c.bf16 %v361_v26, %v361_v26  ;;  %v339_v29 = vpack.c.bf16 %v369_v27, %v369_v27 }
  0xd4   :  { %v159_v30 = vpop.f32.mrf.mxu0  ;;  %v191_v31 = vpop.f32.mrf.mxu1 }
  0xd5   :  { %277 = vst.msk [vmem:[%s504_s2 + $0x18] sm:$0xf] %vm270_vm1, %v331_v28  ;;  %285 = vst.msk [vmem:[%s504_s2 + $0x38] sm:$0xf] %vm270_vm1, %v339_v29  ;;  %v329_v32 = vpack.c.bf16 %v159_v30, %v159_v30  ;;  %v337_v33 = vpack.c.bf16 %v191_v31, %v191_v31 }
  0xd6   :  { %v362_v34 = vpop.f32.mrf.mxu0  ;;  %v370_v35 = vpop.f32.mrf.mxu1 }
  0xd7   :  { %275 = vst.msk [vmem:[%s504_s2 + $0x10] sm:$0xf] %vm270_vm1, %v329_v32  ;;  %283 = vst.msk [vmem:[%s504_s2 + $0x30] sm:$0xf] %vm270_vm1, %v337_v33  ;;  %v332_v36 = vpack.c.bf16 %v362_v34, %v362_v34  ;;  %v340_v37 = vpack.c.bf16 %v370_v35, %v370_v35 }
  0xd8   :  { %v162_v38 = vpop.f32.mrf.mxu0  ;;  %v194_v39 = vpop.f32.mrf.mxu1 }
  0xd9   :  { %278 = vst.msk [vmem:[%s504_s2 + $0x1c] sm:$0xf] %vm270_vm1, %v332_v36  ;;  %286 = vst.msk [vmem:[%s504_s2 + $0x3c] sm:$0xf] %vm270_vm1, %v340_v37  ;;  %v330_v40 = vpack.c.bf16 %v162_v38, %v162_v38  ;;  %v338_v41 = vpack.c.bf16 %v194_v39, %v194_v39 }
  0xdb   :  { %276 = vst.msk [vmem:[%s504_s2 + $0x14] sm:$0xf] %vm270_vm1, %v330_v40  ;;  %284 = vst.msk [vmem:[%s504_s2 + $0x34] sm:$0xf] %vm270_vm1, %v338_v41 }

</bundles_post_ra>
